<compile_context>
chip_gen: v6e
topology: v6e:2x2x1
jax: 0.10.0
libtpu: 0.0.40
codegen_flags: <defaults>
</compile_context>

<pallas_src>
import functools

import numpy as np
import jax
import jax.numpy as jnp
from jax.experimental import pallas as pl
from jax.experimental.pallas import tpu as pltpu


def _patch_embed_kernel(patches_ref, wt_ref, pos_bias_ref, cls_ref, out_ref):
    # patches_ref:  (BB, N, K)   BB images' unfolded patches (compute dtype)
    # wt_ref:       (K, Ep)      projection weight transposed (compute dtype)
    # pos_bias_ref: (N, Ep)      pos_emb[1:] + bias  (f32, batch-invariant)
    # cls_ref:      (1, Ep)      class_token + pos_emb[0]  (f32, batch-invariant)
    # out_ref:      (BB, N+1, Ep)
    bb, n, k = patches_ref.shape
    ep = wt_ref.shape[1]
    p = patches_ref[...].reshape(bb * n, k)                    # one big MXU matmul
    emb = jnp.dot(p, wt_ref[...], preferred_element_type=jnp.float32)  # (BB*N, Ep)
    emb = emb.reshape(bb, n, ep) + pos_bias_ref[...]           # single VPU add
    out_ref[:, 1:, :] = emb.astype(out_ref.dtype)              # patch-embedding slab
    cls_row = jnp.broadcast_to(cls_ref[...].reshape(1, 1, ep), (bb, 1, ep))
    out_ref[:, 0:1, :] = cls_row.astype(out_ref.dtype)         # class-token row


def _round_up(x, m):
    return (x + m - 1) // m * m


def _choose_batch_block(B, N, K, Ep, itemsize, vmem_budget):
    """Largest BB dividing B whose double-buffered blocks fit the VMEM budget."""
    best = 1
    for bb in range(1, B + 1):
        if B % bb:
            continue
        need = 2 * bb * N * K * itemsize                       # patches (2 bufs)
        need += 2 * bb * (N + 1) * Ep * 4                      # output  (2 bufs)
        need += 2 * (K * Ep * itemsize + (N + 1) * Ep * 4)     # resident W^T/pos/cls
        if need > vmem_budget:
            break
        best = bb
        if bb * N >= 1024 and B // bb >= 2:
            break  # MXU well fed; keep >=2 grid steps so megacore can shard
    return best


@functools.partial(jax.jit,
                   static_argnames=("patch_height", "patch_width", "compute_dtype"))
def patch_embedding_forward(x, w, b, class_token, position_embeddings, *,
                            patch_height, patch_width,
                            compute_dtype=jnp.float32):
    """x: (B, C, H, W) float32 (NCHW).  Returns (B, N+1, emb_dim) float32."""
    B, C, H, W = x.shape
    ph, pw = patch_height, patch_width
    assert H % ph == 0 and W % pw == 0, "image size must be divisible by patch size"
    nH, nW = H // ph, W // pw
    N = nH * nW
    K = C * ph * pw
    E = w.shape[0]
    Ep = _round_up(E, 128)                 # lane-dense weight columns / output

    # ---- torch-style unfold -> (B, N, C*ph*pw), channel-major feature order ----
    # (allow_input_fusion lets XLA fuse this transpose into the pallas operand.)
    patches = x.reshape(B, C, nH, ph, nW, pw)
    patches = patches.transpose(0, 2, 4, 1, 3, 5).reshape(B, N, K)
    patches = patches.astype(compute_dtype)

    wt = w.T.astype(compute_dtype)                                   # (K, E)
    pos = position_embeddings.reshape(N + 1, E).astype(jnp.float32)  # (N+1, E)
    bias = b.reshape(1, E).astype(jnp.float32)
    cls = class_token.reshape(1, E).astype(jnp.float32)
    pos_bias = pos[1:] + bias                    # (N, E)  batch-invariant, hoisted
    cls_row = cls + pos[0:1]                     # (1, E)  batch-invariant, hoisted
    if Ep != E:
        wt = jnp.pad(wt, ((0, 0), (0, Ep - E)))
        pos_bias = jnp.pad(pos_bias, ((0, 0), (0, Ep - E)))
        cls_row = jnp.pad(cls_row, ((0, 0), (0, Ep - E)))

    itemsize = np.dtype(compute_dtype).itemsize
    BB = _choose_batch_block(B, N, K, Ep, itemsize,
                             vmem_budget=24 * 1024 * 1024)   # headroom under 32 MiB

    out = pl.pallas_call(
        _patch_embed_kernel,
        out_shape=jax.ShapeDtypeStruct((B, N + 1, Ep), jnp.float32),
        grid_spec=pltpu.PrefetchScalarGridSpec(
            num_scalar_prefetch=0,
            grid=(B // BB,),
            in_specs=[
                pl.BlockSpec((BB, N, K), lambda i: (i, 0, 0)),   # patches (batch block)
                pl.BlockSpec((K, Ep), lambda i: (0, 0)),         # W^T (resident)
                pl.BlockSpec((N, Ep), lambda i: (0, 0)),         # pos[1:] + bias
                pl.BlockSpec((1, Ep), lambda i: (0, 0)),         # cls + pos[0]
            ],
            out_specs=pl.BlockSpec((BB, N + 1, Ep), lambda i: (i, 0, 0)),
        ),
        compiler_params=pltpu.CompilerParams(
            dimension_semantics=("parallel",),          # shard grid across v7x's 2 TCs
            allow_input_fusion=[True, False, False, False],
            vmem_limit_bytes=32 * 1024 * 1024,
        ),
    )(patches, wt, pos_bias, cls_row)

    return out[..., :E] if Ep != E else out


if __name__ == "__main__":
    # Small config consistent with the module's __init__.
    config = dict(image_height=16, image_width=16, im_channels=4,
                  emb_dim=32, patch_emb_drop=0.0, patch_height=4, patch_width=4)
    B = 2
    C, H, W = config["im_channels"], config["image_height"], config["image_width"]
    ph, pw, E = config["patch_height"], config["patch_width"], config["emb_dim"]
    N = (H // ph) * (W // pw)
    K = C * ph * pw

    key = jax.random.PRNGKey(0)
    kx, kw, kb, kc, kp = jax.random.split(key, 5)

    x = jax.random.normal(kx, (B, C, H, W), dtype=jnp.float32)
    # Deterministic parameter init (shapes from the module's __init__).
    w = jax.random.normal(kw, (E, K), dtype=jnp.float32) * 0.02      # nn.Linear weight
    b = jax.random.normal(kb, (E,), dtype=jnp.float32) * 0.02        # nn.Linear bias
    class_token = jax.random.normal(kc, (1, 1, E), dtype=jnp.float32) * 0.02
    position_embeddings = jax.random.normal(kp, (1, N + 1, E), dtype=jnp.float32) * 0.02

    out = patch_embedding_forward(x, w, b, class_token, position_embeddings,
                                  patch_height=ph, patch_width=pw)
    out = jax.block_until_ready(out)

    # Pure-JAX reference for the forward semantics (matches the torch unfold order).
    patches_ref = x.reshape(B, C, H // ph, ph, W // pw, pw)
    patches_ref = patches_ref.transpose(0, 2, 4, 1, 3, 5).reshape(B, N, K)
    emb_ref = patches_ref @ w.T + b
    ref = jnp.concatenate([jnp.broadcast_to(class_token, (B, 1, E)), emb_ref], axis=1)
    ref = ref + position_embeddings

    assert out.shape == (B, N + 1, E)
    # Tolerance covers MXU-vs-XLA f32 matmul precision differences on TPU.
    assert jnp.allclose(out, ref, atol=5e-3, rtol=5e-3), (
        float(jnp.max(jnp.abs(out - ref))))

    # bf16 operand path (v6e/v7x MXU fast path): same semantics, looser tolerance.
    out_bf16 = patch_embedding_forward(x, w, b, class_token, position_embeddings,
                                       patch_height=ph, patch_width=pw,
                                       compute_dtype=jnp.bfloat16)
    out_bf16 = jax.block_until_ready(out_bf16)
    assert out_bf16.shape == (B, N + 1, E)
    assert jnp.allclose(out_bf16, ref, atol=5e-2, rtol=5e-2), (
        float(jnp.max(jnp.abs(out_bf16 - ref))))

    print("KERNEL_OK")
</pallas_src>

<mosaic_0001>
module attributes {stable_mosaic.version = 11 : i64} {
  func.func @_patch_embed_kernel(%arg0: i32, %arg1: memref<2x16x64xf32, #tpu.memory_space<vmem>>, %arg2: memref<64x128xf32, #tpu.memory_space<vmem>>, %arg3: memref<16x128xf32, #tpu.memory_space<vmem>>, %arg4: memref<1x128xf32, #tpu.memory_space<vmem>>, %arg5: memref<2x17x128xf32, #tpu.memory_space<vmem>>) attributes {dimension_semantics = [#tpu.dimension_semantics<parallel>], iteration_bounds = array<i64: 1>, scalar_prefetch = 0 : i64, scratch_operands = 0 : i64, tpu.core_type = #tpu.core_type<tc>, window_params = [{transform_indices = @transform_0, window_bounds = array<i64: 2, 16, 64>}, {pipeline_mode = #tpu.pipeline_mode<synchronous>, transform_indices = @transform_1, window_bounds = array<i64: 64, 128>}, {pipeline_mode = #tpu.pipeline_mode<synchronous>, transform_indices = @transform_2, window_bounds = array<i64: 16, 128>}, {pipeline_mode = #tpu.pipeline_mode<synchronous>, transform_indices = @transform_3, window_bounds = array<i64: 1, 128>}, {transform_indices = @transform_4, window_bounds = array<i64: 2, 17, 128>}]} {
    %c0 = arith.constant 0 : index
    %c0_0 = arith.constant 0 : index
    %c0_1 = arith.constant 0 : index
    %0 = vector.load %arg1[%c0, %c0_0, %c0_1] : memref<2x16x64xf32, #tpu.memory_space<vmem>>, vector<2x16x64xf32>
    %1 = vector.shape_cast %0 : vector<2x16x64xf32> to vector<32x64xf32>
    %c0_2 = arith.constant 0 : index
    %c0_3 = arith.constant 0 : index
    %2 = vector.load %arg2[%c0_2, %c0_3] : memref<64x128xf32, #tpu.memory_space<vmem>>, vector<64x128xf32>
    %cst = arith.constant dense<0.000000e+00> : vector<32x128xf32>
    %3 = tpu.matmul %1, %2, %cst {dimension_numbers = #tpu.dot_dimension_numbers<[1], [0], [0], [1], [0, 0, 1, 1], [], []>} : vector<32x64xf32>, vector<64x128xf32>, vector<32x128xf32> -> vector<32x128xf32>
    %4 = vector.shape_cast %3 : vector<32x128xf32> to vector<2x16x128xf32>
    %c0_4 = arith.constant 0 : index
    %c0_5 = arith.constant 0 : index
    %5 = vector.load %arg3[%c0_4, %c0_5] : memref<16x128xf32, #tpu.memory_space<vmem>>, vector<16x128xf32>
    %6 = vector.shape_cast %5 : vector<16x128xf32> to vector<1x16x128xf32>
    %7 = vector.broadcast %6 : vector<1x16x128xf32> to vector<2x16x128xf32>
    %8 = arith.addf %4, %7 : vector<2x16x128xf32>
    %c0_6 = arith.constant 0 : index
    %c1 = arith.constant 1 : index
    %c0_7 = arith.constant 0 : index
    %9 = vector.load %arg5[%c0_6, %c1, %c0_7] : memref<2x17x128xf32, #tpu.memory_space<vmem>>, vector<2x16x128xf32>
    tpu.vector_store %arg5[%c0_6, %c1, %c0_7], %8 {strides = array<i32>} : memref<2x17x128xf32, #tpu.memory_space<vmem>>, vector<2x16x128xf32>,
    %c0_8 = arith.constant 0 : index
    %c0_9 = arith.constant 0 : index
    %10 = vector.load %arg4[%c0_8, %c0_9] : memref<1x128xf32, #tpu.memory_space<vmem>>, vector<1x128xf32>
    %11 = vector.shape_cast %10 : vector<1x128xf32> to vector<1x1x128xf32>
    %12 = vector.shape_cast %11 : vector<1x1x128xf32> to vector<1x1x128xf32>
    %13 = vector.broadcast %12 : vector<1x1x128xf32> to vector<2x1x128xf32>
    %c0_10 = arith.constant 0 : index
    %c0_11 = arith.constant 0 : index
    %c0_12 = arith.constant 0 : index
    %14 = vector.load %arg5[%c0_10, %c0_11, %c0_12] : memref<2x17x128xf32, #tpu.memory_space<vmem>>, vector<2x1x128xf32>
    tpu.vector_store %arg5[%c0_10, %c0_11, %c0_12], %13 {strides = array<i32>} : memref<2x17x128xf32, #tpu.memory_space<vmem>>, vector<2x1x128xf32>,
    return
  }
  func.func @transform_0(%arg0: i32) -> (i32, i32, i32) {
    %c0_i32 = arith.constant 0 : i32
    %c0_i32_0 = arith.constant 0 : i32
    %c0_i32_1 = arith.constant 0 : i32
    return %arg0, %c0_i32, %c0_i32_0 : i32, i32, i32
  }
  func.func @transform_1(%arg0: i32) -> (i32, i32) {
    %c0_i32 = arith.constant 0 : i32
    %c0_i32_0 = arith.constant 0 : i32
    %c0_i32_1 = arith.constant 0 : i32
    return %c0_i32, %c0_i32_0 : i32, i32
  }
  func.func @transform_2(%arg0: i32) -> (i32, i32) {
    %c0_i32 = arith.constant 0 : i32
    %c0_i32_0 = arith.constant 0 : i32
    %c0_i32_1 = arith.constant 0 : i32
    return %c0_i32, %c0_i32_0 : i32, i32
  }
  func.func @transform_3(%arg0: i32) -> (i32, i32) {
    %c0_i32 = arith.constant 0 : i32
    %c0_i32_0 = arith.constant 0 : i32
    %c0_i32_1 = arith.constant 0 : i32
    return %c0_i32, %c0_i32_0 : i32, i32
  }
  func.func @transform_4(%arg0: i32) -> (i32, i32, i32) {
    %c0_i32 = arith.constant 0 : i32
    %c0_i32_0 = arith.constant 0 : i32
    %c0_i32_1 = arith.constant 0 : i32
    return %arg0, %c0_i32, %c0_i32_0 : i32, i32, i32
  }
}

</mosaic_0001>

<bundles_post_ra>
// kernel: patch_embedding_forward.1
= control target key start
LH: loop header
LB: loop body
LE: loop exit
PB: predicated region body
PF: predicated region fallthrough
CT: control target
= control target key end

     0   :  { %vm29_vm0 = vcmask 523264   ;;  %s286_s1 = inlined_call_operand.vmem [shape: f32[64,128], index: 1, kind: input, shape index: {}]   ;;  %s287_s0 = inlined_call_operand.vmem [shape: f32[2,16,64], index: 0, kind: input, shape index: {}]   ;;  %s288_s3 = inlined_call_operand.vmem [shape: f32[1,128], index: 3, kind: input, shape index: {}]   ;;  %s289_s4 = inlined_call_operand.vmem [shape: f32[2,17,128], index: 4, kind: output, shape index: {}]   ;;  %s290_s2 = inlined_call_operand.vmem [shape: f32[16,128], index: 2, kind: input, shape index: {}]  }
   0x1   :  { %v28_v0 = vld [vmem:[%s286_s1 + $0x38] sm:$0xff]  ;;  %v27_v1 = vld [vmem:[%s286_s1 + $0x30] sm:$0xff]  ;;  %v26_v2 = vld [vmem:[%s286_s1 + $0x28] sm:$0xff] }
   0x2   :  { %160 = vmatprep.subr.mxu0 %v28_v0  ;;  %182 = vmatprep.subr.mxu1 %v28_v0  ;;  %v25_v3 = vld [vmem:[%s286_s1 + $0x20] sm:$0xff]  ;;  %v24_v4 = vld [vmem:[%s286_s1 + $0x18] sm:$0xff]  ;;  %v23_v5 = vld [vmem:[%s286_s1 + $0x10] sm:$0xff] }
   0x3   :  { %161 = vmatpush3.msra.mxu0 %v28_v0  ;;  %190 = vmatpush3.msra.mxu1 %v28_v0  ;;  %v22_v6 = vld [vmem:[%s286_s1 + $0x8] sm:$0xff]  ;;  %v21_v7 = vld [vmem:[%s286_s1] sm:$0xff]  ;;  %v19_v9 = vld [vmem:[%s287_s0 + $0x10] sm:$0xff] }
   0x4   :  { %162 = vmatprep.subr.mxu0 %v27_v1  ;;  %183 = vmatprep.subr.mxu1 %v27_v1  ;;  %v17_v8 = vld [vmem:[%s287_s0] sm:$0xff]  ;;  %v18_v10 = vld [vmem:[%s287_s0 + $0x8] sm:$0xff]  ;;  %v20_v11 = vld [vmem:[%s287_s0 + $0x18] sm:$0xff] }
   0x5   :  { %163 = vmatpush3.msra.mxu0 %v27_v1  ;;  %191 = vmatpush3.msra.mxu1 %v27_v1  ;;  %v137_v12 = vld [vmem:[%s288_s3] sm:$0x1]  ;;  %v128_v13 = vld [vmem:[%s290_s2 + $0x8] sm:$0xff] }
   0x6   :  { %164 = vmatprep.subr.mxu0 %v26_v2  ;;  %184 = vmatprep.subr.mxu1 %v26_v2  ;;  %138 = vst [vmem:[%s289_s4] sm:$0x1] %v137_v12  ;;  %139 = vst [vmem:[%s289_s4 + $0x18] sm:$0x1] %v137_v12  ;;  %v127_v16 = vld [vmem:[%s290_s2] sm:$0xff] }
   0x7   :  { %165 = vmatpush3.msra.mxu0 %v26_v2  ;;  %192 = vmatpush3.msra.mxu1 %v26_v2 }
   0x8   :  { %166 = vmatprep.subr.mxu0 %v25_v3  ;;  %185 = vmatprep.subr.mxu1 %v25_v3 }
   0x9   :  { %167 = vmatpush3.msra.mxu0 %v25_v3  ;;  %193 = vmatpush3.msra.mxu1 %v25_v3 }
   0xa   :  { %168 = vmatprep.subr.mxu0 %v24_v4  ;;  %186 = vmatprep.subr.mxu1 %v24_v4 }
   0xb   :  { %169 = vmatpush3.msra.mxu0 %v24_v4  ;;  %194 = vmatpush3.msra.mxu1 %v24_v4 }
   0xc   :  { %170 = vmatprep.subr.mxu0 %v23_v5  ;;  %187 = vmatprep.subr.mxu1 %v23_v5 }
   0xd   :  { %171 = vmatpush3.msra.mxu0 %v23_v5  ;;  %195 = vmatpush3.msra.mxu1 %v23_v5 }
   0xe   :  { %172 = vmatprep.subr.mxu0 %v22_v6  ;;  %188 = vmatprep.subr.mxu1 %v22_v6 }
   0xf   :  { %173 = vmatpush3.msra.mxu0 %v22_v6  ;;  %196 = vmatpush3.msra.mxu1 %v22_v6 }
  0x10   :  { %174 = vmatprep.subr.mxu0 %v21_v7  ;;  %189 = vmatprep.subr.mxu1 %v21_v7 }
  0x11   :  { %175 = vmatpush3.msra.mxu0 %v21_v7  ;;  %197 = vmatpush3.msra.mxu1 %v21_v7 }
  0x12   :  { %176 = vmatprep.mubr.msk.f32.mxu0 %vm29_vm0, %v17_v8  ;;  %179 = vmatprep.mubr.msk.f32.mxu1 %vm29_vm0, %v19_v9 }
  0x13   :  { %177 = vmatmul.mubr.msk.f32.vlgmr.msra.gmra.mxu0 %vm29_vm0, %v18_v10  ;;  %180 = vmatmul.mubr.msk.f32.vlgmr.msra.gmra.mxu1 %vm29_vm0, %v20_v11 }
  0xd3   :  { %v178_v14 = vpop.f32.mrf.mxu0  ;;  %v181_v15 = vpop.f32.mrf.mxu1 }
  0xd4   :  { %v130_v17 = vadd.f32 %v178_v14, %v128_v13  ;;  %v132_v18 = vadd.f32 %v181_v15, %v128_v13 }
  0xd5   :  { %v108_v19 = vpop.f32.mrf.mxu0  ;;  %v118_v20 = vpop.f32.mrf.mxu1 }
  0xd6   :  { %134 = vst [vmem:[%s289_s4 + $0x9] sm:$0xff] %v130_v17  ;;  %136 = vst [vmem:[%s289_s4 + $0x21] sm:$0xff] %v132_v18  ;;  %v129_v21 = vadd.f32 %v127_v16, %v108_v19  ;;  %v131_v22 = vadd.f32 %v127_v16, %v118_v20 }
  0xd8   :  { %133 = vst [vmem:[%s289_s4 + $0x1] sm:$0xff] %v129_v21  ;;  %135 = vst [vmem:[%s289_s4 + $0x19] sm:$0xff] %v131_v22 }

</bundles_post_ra>
